<compile_context>
chip_gen: v7x
topology: tpu7x:2x2x1
jax: 0.10.0
libtpu: 0.0.40
codegen_flags: <defaults>
</compile_context>

<pallas_src>
import functools

import jax
import jax.numpy as jnp
from jax.experimental import pallas as pl
from jax.experimental.pallas import tpu as pltpu

DROPOUT_P = 0.25
LANE = 128
MAX_BATCH_TILE = 256  # rows of f32 activations per tile; safe on v5e/v6e/v7x VMEM


def _qnet_kernel(training, *refs):
    """fc1 -> relu -> (dropout) -> fc2 -> relu -> (dropout) -> fc3."""
    if training:
        (x_ref, m1_ref, m2_ref,
         w1_ref, b1_ref, w2_ref, b2_ref, w3_ref, b3_ref, o_ref) = refs
    else:
        (x_ref,
         w1_ref, b1_ref, w2_ref, b2_ref, w3_ref, b3_ref, o_ref) = refs
        m1_ref = m2_ref = None

    # fc1: bf16 operands on the MXU, f32 accumulate; elementwise math in f32.
    h1 = jnp.dot(x_ref[...], w1_ref[...], preferred_element_type=jnp.float32)
    h1 = jnp.maximum(h1 + b1_ref[...], 0.0)
    if training:
        h1 = h1 * m1_ref[...]  # mask already scaled by 1/(1-p)

    h2 = jnp.dot(h1.astype(w2_ref.dtype), w2_ref[...],
                 preferred_element_type=jnp.float32)
    h2 = jnp.maximum(h2 + b2_ref[...], 0.0)
    if training:
        h2 = h2 * m2_ref[...]

    out = jnp.dot(h2.astype(w3_ref.dtype), w3_ref[...],
                  preferred_element_type=jnp.float32)
    o_ref[...] = (out + b3_ref[...]).astype(o_ref.dtype)


def qnetwork_forward(x, params, *, training=False, dropout_key=None,
                     compute_dtype=jnp.bfloat16):
    """QNetwork forward pass as a single batch-gridded Pallas kernel."""
    w1, b1, w2, b2, w3, b3 = params
    batch, state_size = x.shape
    fc1 = w1.shape[1]
    fc2 = w2.shape[1]
    action_size = w3.shape[1]

    # --- lane-dense output: pad action dim up to a multiple of 128 ---------
    padded_actions = max(LANE, ((action_size + LANE - 1) // LANE) * LANE)
    w3p = jnp.zeros((fc2, padded_actions), w3.dtype).at[:, :action_size].set(w3)
    b3p = jnp.zeros((1, padded_actions), b3.dtype).at[:, :action_size].set(b3)

    # --- batch tiling -------------------------------------------------------
    if batch <= MAX_BATCH_TILE:
        tb = batch                      # single full-extent block
        padded_batch = batch
    else:
        tb = MAX_BATCH_TILE
        padded_batch = ((batch + tb - 1) // tb) * tb

    xp = x
    if padded_batch != batch:
        xp = jnp.zeros((padded_batch, state_size), x.dtype).at[:batch].set(x)

    # --- dtype prep: bf16 MXU operands, f32 biases --------------------------
    xp = xp.astype(compute_dtype)
    w1c = w1.astype(compute_dtype)
    w2c = w2.astype(compute_dtype)
    w3c = w3p.astype(compute_dtype)
    b1f = b1.astype(jnp.float32)
    b2f = b2.astype(jnp.float32)
    b3f = b3p.astype(jnp.float32)

    grid = (padded_batch // tb,)
    row = lambda i: (i, 0)    # batch-tiled operands
    const = lambda i: (0, 0)  # VMEM-resident weights / biases

    in_specs = [pl.BlockSpec((tb, state_size), row)]
    inputs = [xp]

    if training:
        if dropout_key is None:
            dropout_key = jax.random.PRNGKey(0)
        k1, k2 = jax.random.split(dropout_key)
        scale = jnp.float32(1.0 / (1.0 - DROPOUT_P))
        m1 = jax.random.bernoulli(
            k1, 1.0 - DROPOUT_P, (padded_batch, fc1)).astype(jnp.float32) * scale
        m2 = jax.random.bernoulli(
            k2, 1.0 - DROPOUT_P, (padded_batch, fc2)).astype(jnp.float32) * scale
        in_specs += [pl.BlockSpec((tb, fc1), row), pl.BlockSpec((tb, fc2), row)]
        inputs += [m1, m2]

    in_specs += [
        pl.BlockSpec((state_size, fc1), const), pl.BlockSpec((1, fc1), const),
        pl.BlockSpec((fc1, fc2), const),        pl.BlockSpec((1, fc2), const),
        pl.BlockSpec((fc2, padded_actions), const),
        pl.BlockSpec((1, padded_actions), const),
    ]
    inputs += [w1c, b1f, w2c, b2f, w3c, b3f]

    flops = 2 * padded_batch * (state_size * fc1 + fc1 * fc2 + fc2 * padded_actions)
    bytes_accessed = sum(int(a.size) * a.dtype.itemsize for a in inputs)
    bytes_accessed += padded_batch * padded_actions * 4  # output

    out = pl.pallas_call(
        functools.partial(_qnet_kernel, training),
        out_shape=jax.ShapeDtypeStruct((padded_batch, padded_actions), jnp.float32),
        grid=grid,
        in_specs=in_specs,
        out_specs=pl.BlockSpec((tb, padded_actions), row),
        compiler_params=pltpu.CompilerParams(
            dimension_semantics=("parallel",)),
        cost_estimate=pl.CostEstimate(
            flops=flops, transcendentals=0, bytes_accessed=bytes_accessed),
    )(*inputs)

    return out[:batch, :action_size]


def init_qnetwork_params(key, state_size, action_size, fc1_units=128, fc2_units=128):
    """nn.Linear-style init (U[-1/sqrt(fan_in), 1/sqrt(fan_in)]), weights as [in, out]."""
    def linear(key, fan_in, fan_out):
        kw, kb = jax.random.split(key)
        bound = 1.0 / jnp.sqrt(jnp.float32(fan_in))
        w = jax.random.uniform(kw, (fan_in, fan_out), jnp.float32, -bound, bound)
        b = jax.random.uniform(kb, (1, fan_out), jnp.float32, -bound, bound)
        return w, b

    k1, k2, k3 = jax.random.split(key, 3)
    w1, b1 = linear(k1, state_size, fc1_units)
    w2, b2 = linear(k2, fc1_units, fc2_units)
    w3, b3 = linear(k3, fc2_units, action_size)
    return (w1, b1, w2, b2, w3, b3)


def qnetwork_reference(x, params, compute_dtype=jnp.bfloat16):
    """Pure-JAX eval-mode reference with the same bf16-operand / f32-accumulate math."""
    w1, b1, w2, b2, w3, b3 = params
    xd = x.astype(compute_dtype)
    h1 = jnp.maximum(
        jnp.dot(xd, w1.astype(compute_dtype), preferred_element_type=jnp.float32) + b1, 0.0)
    h2 = jnp.maximum(
        jnp.dot(h1.astype(compute_dtype), w2.astype(compute_dtype),
                preferred_element_type=jnp.float32) + b2, 0.0)
    return jnp.dot(h2.astype(compute_dtype), w3.astype(compute_dtype),
                   preferred_element_type=jnp.float32) + b3


if __name__ == "__main__":
    state_size = 8
    action_size = 4
    batch = 2

    key = jax.random.PRNGKey(0)
    k_params, k_x, k_drop, k_xbig = jax.random.split(key, 4)

    params = init_qnetwork_params(k_params, state_size, action_size)
    x = jax.random.normal(k_x, (batch, state_size), dtype=jnp.float32)

    # Eval-mode forward (dropout = identity): must match the pure-JAX reference.
    out_eval = jax.block_until_ready(qnetwork_forward(x, params, training=False))
    ref = qnetwork_reference(x, params)
    assert out_eval.shape == (batch, action_size)
    assert jnp.allclose(out_eval, ref, atol=1e-4, rtol=1e-4), "eval-mode mismatch"

    # Training-mode forward exercises the dropout-mask path.
    out_train = jax.block_until_ready(
        qnetwork_forward(x, params, training=True, dropout_key=k_drop))
    assert out_train.shape == (batch, action_size)
    assert bool(jnp.all(jnp.isfinite(out_train)))

    # Larger batch exercises the gridded / padded path (tb=256, grid=(2,)).
    x_big = jax.random.normal(k_xbig, (512, state_size), dtype=jnp.float32)
    out_big = jax.block_until_ready(qnetwork_forward(x_big, params, training=False))
    ref_big = qnetwork_reference(x_big, params)
    assert out_big.shape == (512, action_size)
    assert jnp.allclose(out_big, ref_big, atol=1e-4, rtol=1e-4), "gridded path mismatch"

    print("KERNEL_OK")
</pallas_src>

<mosaic_0001>
module attributes {stable_mosaic.version = 11 : i64} {
  func.func @_qnet_kernel(%arg0: i32, %arg1: memref<2x8xbf16, #tpu.memory_space<vmem>>, %arg2: memref<8x128xbf16, #tpu.memory_space<vmem>>, %arg3: memref<1x128xf32, #tpu.memory_space<vmem>>, %arg4: memref<128x128xbf16, #tpu.memory_space<vmem>>, %arg5: memref<1x128xf32, #tpu.memory_space<vmem>>, %arg6: memref<128x128xbf16, #tpu.memory_space<vmem>>, %arg7: memref<1x128xf32, #tpu.memory_space<vmem>>, %arg8: memref<2x128xf32, #tpu.memory_space<vmem>>) attributes {dimension_semantics = [#tpu.dimension_semantics<parallel>], iteration_bounds = array<i64: 1>, scalar_prefetch = 0 : i64, scratch_operands = 0 : i64, tpu.core_type = #tpu.core_type<tc>, window_params = [{transform_indices = @transform_0, window_bounds = array<i64: 2, 8>}, {pipeline_mode = #tpu.pipeline_mode<synchronous>, transform_indices = @transform_1, window_bounds = array<i64: 8, 128>}, {pipeline_mode = #tpu.pipeline_mode<synchronous>, transform_indices = @transform_2, window_bounds = array<i64: 1, 128>}, {pipeline_mode = #tpu.pipeline_mode<synchronous>, transform_indices = @transform_3, window_bounds = array<i64: 128, 128>}, {pipeline_mode = #tpu.pipeline_mode<synchronous>, transform_indices = @transform_4, window_bounds = array<i64: 1, 128>}, {pipeline_mode = #tpu.pipeline_mode<synchronous>, transform_indices = @transform_5, window_bounds = array<i64: 128, 128>}, {pipeline_mode = #tpu.pipeline_mode<synchronous>, transform_indices = @transform_6, window_bounds = array<i64: 1, 128>}, {transform_indices = @transform_7, window_bounds = array<i64: 2, 128>}]} {
    %c0 = arith.constant 0 : index
    %c0_0 = arith.constant 0 : index
    %0 = vector.load %arg1[%c0, %c0_0] : memref<2x8xbf16, #tpu.memory_space<vmem>>, vector<2x8xbf16>
    %c0_1 = arith.constant 0 : index
    %c0_2 = arith.constant 0 : index
    %1 = vector.load %arg2[%c0_1, %c0_2] : memref<8x128xbf16, #tpu.memory_space<vmem>>, vector<8x128xbf16>
    %cst = arith.constant dense<0.000000e+00> : vector<2x128xf32>
    %2 = tpu.matmul %0, %1, %cst {dimension_numbers = #tpu.dot_dimension_numbers<[1], [0], [0], [1], [0, 0, 1, 1], [], []>} : vector<2x8xbf16>, vector<8x128xbf16>, vector<2x128xf32> -> vector<2x128xf32>
    %c0_3 = arith.constant 0 : index
    %c0_4 = arith.constant 0 : index
    %3 = vector.load %arg3[%c0_3, %c0_4] : memref<1x128xf32, #tpu.memory_space<vmem>>, vector<1x128xf32>
    %4 = vector.broadcast %3 : vector<1x128xf32> to vector<2x128xf32>
    %5 = arith.addf %2, %4 : vector<2x128xf32>
    %cst_5 = arith.constant 0.000000e+00 : f32
    %6 = vector.broadcast %cst_5 : f32 to vector<2x128xf32>
    %7 = arith.maximumf %5, %6 : vector<2x128xf32>
    %8 = arith.truncf %7 : vector<2x128xf32> to vector<2x128xbf16>
    %c0_6 = arith.constant 0 : index
    %c0_7 = arith.constant 0 : index
    %9 = vector.load %arg4[%c0_6, %c0_7] : memref<128x128xbf16, #tpu.memory_space<vmem>>, vector<128x128xbf16>
    %cst_8 = arith.constant dense<0.000000e+00> : vector<2x128xf32>
    %10 = tpu.matmul %8, %9, %cst_8 {dimension_numbers = #tpu.dot_dimension_numbers<[1], [0], [0], [1], [0, 0, 1, 1], [], []>} : vector<2x128xbf16>, vector<128x128xbf16>, vector<2x128xf32> -> vector<2x128xf32>
    %c0_9 = arith.constant 0 : index
    %c0_10 = arith.constant 0 : index
    %11 = vector.load %arg5[%c0_9, %c0_10] : memref<1x128xf32, #tpu.memory_space<vmem>>, vector<1x128xf32>
    %12 = vector.broadcast %11 : vector<1x128xf32> to vector<2x128xf32>
    %13 = arith.addf %10, %12 : vector<2x128xf32>
    %cst_11 = arith.constant 0.000000e+00 : f32
    %14 = vector.broadcast %cst_11 : f32 to vector<2x128xf32>
    %15 = arith.maximumf %13, %14 : vector<2x128xf32>
    %16 = arith.truncf %15 : vector<2x128xf32> to vector<2x128xbf16>
    %c0_12 = arith.constant 0 : index
    %c0_13 = arith.constant 0 : index
    %17 = vector.load %arg6[%c0_12, %c0_13] : memref<128x128xbf16, #tpu.memory_space<vmem>>, vector<128x128xbf16>
    %cst_14 = arith.constant dense<0.000000e+00> : vector<2x128xf32>
    %18 = tpu.matmul %16, %17, %cst_14 {dimension_numbers = #tpu.dot_dimension_numbers<[1], [0], [0], [1], [0, 0, 1, 1], [], []>} : vector<2x128xbf16>, vector<128x128xbf16>, vector<2x128xf32> -> vector<2x128xf32>
    %c0_15 = arith.constant 0 : index
    %c0_16 = arith.constant 0 : index
    %19 = vector.load %arg7[%c0_15, %c0_16] : memref<1x128xf32, #tpu.memory_space<vmem>>, vector<1x128xf32>
    %20 = vector.broadcast %19 : vector<1x128xf32> to vector<2x128xf32>
    %21 = arith.addf %18, %20 : vector<2x128xf32>
    %c0_17 = arith.constant 0 : index
    %c0_18 = arith.constant 0 : index
    %22 = vector.load %arg8[%c0_17, %c0_18] : memref<2x128xf32, #tpu.memory_space<vmem>>, vector<2x128xf32>
    tpu.vector_store %arg8[%c0_17, %c0_18], %21 {strides = array<i32>} : memref<2x128xf32, #tpu.memory_space<vmem>>, vector<2x128xf32>,
    return
  }
  func.func @transform_0(%arg0: i32) -> (i32, i32) {
    %c0_i32 = arith.constant 0 : i32
    %c0_i32_0 = arith.constant 0 : i32
    return %arg0, %c0_i32 : i32, i32
  }
  func.func @transform_1(%arg0: i32) -> (i32, i32) {
    %c0_i32 = arith.constant 0 : i32
    %c0_i32_0 = arith.constant 0 : i32
    %c0_i32_1 = arith.constant 0 : i32
    return %c0_i32, %c0_i32_0 : i32, i32
  }
  func.func @transform_2(%arg0: i32) -> (i32, i32) {
    %c0_i32 = arith.constant 0 : i32
    %c0_i32_0 = arith.constant 0 : i32
    %c0_i32_1 = arith.constant 0 : i32
    return %c0_i32, %c0_i32_0 : i32, i32
  }
  func.func @transform_3(%arg0: i32) -> (i32, i32) {
    %c0_i32 = arith.constant 0 : i32
    %c0_i32_0 = arith.constant 0 : i32
    %c0_i32_1 = arith.constant 0 : i32
    return %c0_i32, %c0_i32_0 : i32, i32
  }
  func.func @transform_4(%arg0: i32) -> (i32, i32) {
    %c0_i32 = arith.constant 0 : i32
    %c0_i32_0 = arith.constant 0 : i32
    %c0_i32_1 = arith.constant 0 : i32
    return %c0_i32, %c0_i32_0 : i32, i32
  }
  func.func @transform_5(%arg0: i32) -> (i32, i32) {
    %c0_i32 = arith.constant 0 : i32
    %c0_i32_0 = arith.constant 0 : i32
    %c0_i32_1 = arith.constant 0 : i32
    return %c0_i32, %c0_i32_0 : i32, i32
  }
  func.func @transform_6(%arg0: i32) -> (i32, i32) {
    %c0_i32 = arith.constant 0 : i32
    %c0_i32_0 = arith.constant 0 : i32
    %c0_i32_1 = arith.constant 0 : i32
    return %c0_i32, %c0_i32_0 : i32, i32
  }
  func.func @transform_7(%arg0: i32) -> (i32, i32) {
    %c0_i32 = arith.constant 0 : i32
    %c0_i32_0 = arith.constant 0 : i32
    return %arg0, %c0_i32 : i32, i32
  }
}

</mosaic_0001>

<bundles_post_ra>
// kernel: tpu_custom_call.1
= control target key start
LH: loop header
LB: loop body
LE: loop exit
PB: predicated region body
PF: predicated region fallthrough
CT: control target
= control target key end

     0   :  { %12 = vsyncpa [#allocation3], 0  ;;  %s750_s0 = inlined_call_operand.hbm [shape: bf16[2,8], index: 0, kind: input, shape index: {}]   ;;  %s751_s1 = inlined_call_operand.hbm [shape: bf16[8,128], index: 1, kind: input, shape index: {}]   ;;  %s752_s2 = inlined_call_operand.vmem [shape: f32[1,128], index: 2, kind: input, shape index: {}]   ;;  %s753_s3 = inlined_call_operand.hbm [shape: bf16[128,128], index: 3, kind: input, shape index: {}]   ;;  %s754_s4 = inlined_call_operand.vmem [shape: f32[1,128], index: 4, kind: input, shape index: {}]   ;;  %s755_s5 = inlined_call_operand.hbm [shape: bf16[128,128], index: 5, kind: input, shape index: {}]   ;;  %s756_s6 = inlined_call_operand.vmem [shape: f32[1,128], index: 6, kind: input, shape index: {}]   ;;  %s757_s7 = inlined_call_operand.hbm [shape: f32[2,128], index: 7, kind: output, shape index: {}]  }
   0x1   :  { %13 = vsyncpa [#allocation6], 0 }
   0x2   :  { %14 = vsyncpa [#allocation9], 0 }
   0x3   :  { %15 = vsyncpa [#allocation4], 0  ;;  %s609_s24 = smov [#allocation5]   ;;  %s610_s26 = smov [#allocation2]  }
   0x4   :  { %s32_s25 = sshll.u32 %s609_s24, 4  ;;  %s22_s27 = sshll.u32 %s610_s26, 4  ;;  %s33_s25 = int_to_ptr.vmem [resolvable:$true] %s32_s25  ;;  %s23_s27 = int_to_ptr.vmem [resolvable:$true] %s22_s27 }
   0x5   :  { %s491_s30 = scalar_lea.hbm %s751_s1, 64 }
   0x6   :  { %p492_p0 = scmp.ne.s32.totalorder %s751_s1, %s491_s30  ;;  %p495_p1 = scmp.lt.u32.totalorder %s491_s30, %s751_s1 }
   0x8   :  { %p497_p2 = pnand %p495_p1, %p492_p0 }
   0xa   :  { %500 = shalt.err (!%p497_p2)
}
   0xb   :  { %s501_s12 = scalar_lea.vmem %s33_s25, 64  ;;  %p506_p4 = scmp.lt.s32.totalorder %s33_s25, %s33_s25 }
   0xc   :  { %p502_p3 = scmp.ne.s32.totalorder %s33_s25, %s501_s12  ;;  %p507_p5 = scmp.lt.s32.totalorder %s501_s12, %s501_s12 }
   0xe   :  { %p508_p6 = por %p507_p5, %p506_p4 }
  0x10   :  { %p509_p7 = pnand %p508_p6, %p502_p3 }
  0x12   :  { %512 = shalt.err (!%p509_p7)
}
  0x13   :  { %35 = dma.hbm_to_vmem [thread:$0]  %s751_s1, 64, %s33_s25, [#allocation6]  }
  0x14   :  { %s513_s17 = scalar_lea.hbm %s750_s0, 16 }
  0x15   :  { %p514_p8 = scmp.ne.s32.totalorder %s750_s0, %s513_s17  ;;  %p517_p9 = scmp.lt.u32.totalorder %s513_s17, %s750_s0 }
  0x17   :  { %p519_p10 = pnand %p517_p9, %p514_p8 }
  0x19   :  { %522 = shalt.err (!%p519_p10)
}
  0x1a   :  { %s523_s22 = scalar_lea.vmem %s23_s27, 16  ;;  %s527_s23 = scalar_lea.vmem %s23_s27, 32 }
  0x1b   :  { %p524_p11 = scmp.ne.s32.totalorder %s23_s27, %s523_s22  ;;  %p528_p12 = scmp.lt.s32.totalorder %s23_s27, %s23_s27 }
  0x1c   :  { %p529_p13 = scmp.lt.s32.totalorder %s527_s23, %s523_s22 }
  0x1e   :  { %p530_p0 = por %p529_p13, %p528_p12 }
  0x20   :  { %p531_p1 = pnand %p530_p0, %p524_p11 }
  0x22   :  { %534 = shalt.err (!%p531_p1)
}
  0x23   :  { %25 = dma.hbm_to_vmem [thread:$0]  %s750_s0, 16, %s23_s27, [#allocation3]  }
  0x24   :  { %s611_s25 = smov [#allocation7]   ;;  %s535_s30 = scalar_lea.hbm %s753_s3, 1024 }
  0x25   :  { %s43_s26 = sshll.u32 %s611_s25, 4  ;;  %p536_p2 = scmp.ne.s32.totalorder %s753_s3, %s535_s30  ;;  %s44_s26 = int_to_ptr.vmem [resolvable:$true] %s43_s26 }
  0x26   :  { %p539_p3 = scmp.lt.u32.totalorder %s535_s30, %s753_s3 }
  0x28   :  { %p541_p4 = pnand %p539_p3, %p536_p2 }
  0x2a   :  { %544 = shalt.err (!%p541_p4)
}
  0x2b   :  { %s545_s12 = scalar_lea.vmem %s44_s26, 1024  ;;  %p550_p6 = scmp.lt.s32.totalorder %s44_s26, %s44_s26 }
  0x2c   :  { %p546_p5 = scmp.ne.s32.totalorder %s44_s26, %s545_s12  ;;  %p551_p7 = scmp.lt.s32.totalorder %s545_s12, %s545_s12 }
  0x2e   :  { %p552_p8 = por %p551_p7, %p550_p6 }
  0x30   :  { %p553_p9 = pnand %p552_p8, %p546_p5 }
  0x32   :  { %556 = shalt.err (!%p553_p9)
}
  0x33   :  { %s612_s0 = smov 64   ;;  %s613_s27 = smov 4  }
  0x34   :  { %49 = dma.hbm_to_vmem [thread:$0]  %s753_s3, 1024, %s44_s26, [#allocation6], %s612_s0, %s612_s0, %s613_s27  }
  0x35   :  { %s614_s15 = smov [#allocation8]   ;;  %s557_s19 = scalar_lea.hbm %s755_s5, 1024 }
  0x36   :  { %s57_s16 = sshll.u32 %s614_s15, 4  ;;  %p558_p10 = scmp.ne.s32.totalorder %s755_s5, %s557_s19  ;;  %s58_s16 = int_to_ptr.vmem [resolvable:$true] %s57_s16 }
  0x37   :  { %p561_p11 = scmp.lt.u32.totalorder %s557_s19, %s755_s5 }
  0x39   :  { %p563_p12 = pnand %p561_p11, %p558_p10 }
  0x3b   :  { %566 = shalt.err (!%p563_p12)
}
  0x3c   :  { %s567_s1 = scalar_lea.vmem %s58_s16, 1024  ;;  %p572_p0 = scmp.lt.s32.totalorder %s58_s16, %s58_s16 }
  0x3d   :  { %p568_p13 = scmp.ne.s32.totalorder %s58_s16, %s567_s1  ;;  %p573_p1 = scmp.lt.s32.totalorder %s567_s1, %s567_s1 }
  0x3f   :  { %p574_p2 = por %p573_p1, %p572_p0 }
  0x41   :  { %p575_p3 = pnand %p574_p2, %p568_p13 }
  0x43   :  { %578 = shalt.err (!%p575_p3)
}
  0x44   :  { %63 = dma.hbm_to_vmem [thread:$0]  %s755_s5, 1024, %s58_s16, [#allocation9], %s612_s0, %s612_s0, %s613_s27  }
  0x45   :  { %601 = dma.done.wait [#allocation3], 16  }
  0x46   :  { %602 = vsyncadd [#allocation3], 4294967280 }
  0x47   :  { %603 = dma.done.wait [#allocation6], 1088  }
  0x48   :  { %604 = vsyncadd [#allocation6], 4294966208 }
  0x49   :  { %605 = dma.done.wait [#allocation9], 1024  }
  0x4a   :  { %606 = vsyncadd [#allocation9], 4294966272  ;;  %v615_v0 = vmov 0.0   ;;  %vm616_vm0 = vmmov 0   ;;  %vm92_vm1 = vcmask 1043456   ;;  %vm88_vm2 = vcmask 64512  }
  0x4b   :  { %420 = vmatprep.subr.bf16.mxu0 %v615_v0  ;;  %422 = vmatprep.mubr.msk.bf16.mxu0 %vm616_vm0, %v615_v0  ;;  %v80_v1 = vld [vmem:[#allocation5] sm:$0xf]  ;;  %v475_v3 = vld [vmem:[#allocation7] sm:$0xff]   ;;  %v79_v4 = vld [vmem:[#allocation2] sm:$0x1]  ;;  %s617_s30 = smov [#allocation10]  }
  0x4c   :  { %426 = vmatprep.subr.bf16.mxu1 %v615_v0  ;;  %442 = vmatprep.mubr.msk.bf16.mxu1 %vm616_vm0, %v615_v0  ;;  %v94_v2 = vsel %vm92_vm1, %v80_v1, 0  ;;  %v476_v5 = vld [vmem:[#allocation7 + $0x8] sm:$0xff]   ;;  %v477_v6 = vld [vmem:[#allocation7 + $0x10] sm:$0xff]   ;;  %v478_v7 = vld [vmem:[#allocation7 + $0x18] sm:$0xff]   ;;  %s369_s8 = sshll.u32 %s617_s30, 4  ;;  %s370_s8 = int_to_ptr.vmem [resolvable:$true] %s369_s8 }
  0x4d   :  { %421 = vmatpush3.bf16.msra.mxu0 %v94_v2  ;;  %427 = vmatpush3.bf16.msra.mxu1 %v475_v3  ;;  %v479_v8 = vld [vmem:[#allocation7 + $0x20] sm:$0xff]   ;;  %v480_v9 = vld [vmem:[#allocation7 + $0x28] sm:$0xff]   ;;  %v481_v10 = vld [vmem:[#allocation7 + $0x30] sm:$0xff]   ;;  %p584_p5 = scmp.lt.s32.totalorder %s370_s8, %s370_s8 }
  0x4e   :  { %446 = vmatprep.subr.bf16.mxu0 %v615_v0  ;;  %428 = vmatprep.subr.bf16.mxu1 %v615_v0  ;;  %v482_v11 = vld [vmem:[#allocation7 + $0x38] sm:$0xff]   ;;  %v483_v12 = vld [vmem:[#allocation8] sm:$0xff]   ;;  %v484_v13 = vld [vmem:[#allocation8 + $0x8] sm:$0xff]  }
  0x4f   :  { %v485_v14 = vld [vmem:[#allocation8 + $0x10] sm:$0xff]   ;;  %v486_v15 = vld [vmem:[#allocation8 + $0x18] sm:$0xff]   ;;  %v487_v16 = vld [vmem:[#allocation8 + $0x20] sm:$0xff]  }
  0x50   :  { %423 = vmatmul.mubr.msk.bf16.vlgmr.msra.gmra.mrb[0].mxu0 %vm88_vm2, %v79_v4  ;;  %v488_v17 = vld [vmem:[#allocation8 + $0x28] sm:$0xff]   ;;  %v380_v18 = vld [vmem:[%s752_s2] ss:$0 sm:$0xff]  ;;  %v489_v26 = vld [vmem:[#allocation8 + $0x30] sm:$0xff]  }
  0x51   :  { %462 = vmatprep.mubr.msk.bf16.mxu0 %vm616_vm0, %v615_v0  ;;  %429 = vmatpush3.bf16.msra.mxu1 %v476_v5  ;;  %v490_v27 = vld [vmem:[#allocation8 + $0x38] sm:$0xff]  }
  0x52   :  { %430 = vmatprep.subr.bf16.mxu1 %v615_v0  ;;  %447 = vmatpush3.bf16.msra.mxu0 %v483_v12  ;;  %v382_v28 = vld [vmem:[%s754_s4] ss:$0 sm:$0xff]  ;;  %s579_s4 = scalar_lea.vmem %s370_s8, 32 }
  0x53   :  { %448 = vmatprep.subr.bf16.mxu0 %v615_v0  ;;  %v391_v36 = vld [vmem:[%s756_s6] ss:$0 sm:$0xff]  ;;  %p580_p4 = scmp.ne.s32.totalorder %s370_s8, %s579_s4  ;;  %p585_p6 = scmp.lt.s32.totalorder %s579_s4, %s579_s4 }
  0x55   :  { %431 = vmatpush3.bf16.msra.mxu1 %v477_v6  ;;  %p586_p7 = por %p585_p6, %p584_p5 }
  0x56   :  { %432 = vmatprep.subr.bf16.mxu1 %v615_v0  ;;  %449 = vmatpush3.bf16.msra.mxu0 %v484_v13 }
  0x57   :  { %450 = vmatprep.subr.bf16.mxu0 %v615_v0  ;;  %p587_p8 = pnand %p586_p7, %p580_p4 }
  0x59   :  { %433 = vmatpush3.bf16.msra.mxu1 %v478_v7 }
  0x5a   :  { %434 = vmatprep.subr.bf16.mxu1 %v615_v0  ;;  %451 = vmatpush3.bf16.msra.mxu0 %v485_v14 }
  0x5b   :  { %452 = vmatprep.subr.bf16.mxu0 %v615_v0 }
  0x5d   :  { %435 = vmatpush3.bf16.msra.mxu1 %v479_v8 }
  0x5e   :  { %436 = vmatprep.subr.bf16.mxu1 %v615_v0  ;;  %453 = vmatpush3.bf16.msra.mxu0 %v486_v15 }
  0x5f   :  { %454 = vmatprep.subr.bf16.mxu0 %v615_v0 }
  0x61   :  { %437 = vmatpush3.bf16.msra.mxu1 %v480_v9 }
  0x62   :  { %438 = vmatprep.subr.bf16.mxu1 %v615_v0  ;;  %455 = vmatpush3.bf16.msra.mxu0 %v487_v16 }
  0x63   :  { %456 = vmatprep.subr.bf16.mxu0 %v615_v0 }
  0x65   :  { %439 = vmatpush3.bf16.msra.mxu1 %v481_v10 }
  0x66   :  { %440 = vmatprep.subr.bf16.mxu1 %v615_v0  ;;  %457 = vmatpush3.bf16.msra.mxu0 %v488_v17 }
  0x67   :  { %458 = vmatprep.subr.bf16.mxu0 %v615_v0 }
  0x69   :  { %441 = vmatpush3.bf16.msra.mxu1 %v482_v11 }
  0x6a   :  { %459 = vmatpush3.bf16.msra.mxu0 %v489_v26 }
  0x6b   :  { %460 = vmatprep.subr.bf16.mxu0 %v615_v0 }
  0x6e   :  { %461 = vmatpush3.bf16.msra.mxu0 %v490_v27 }
 0x123   :  { %v130_v19 = vpop.f32.mrb[0].mxu0 }
 0x124   :  { %v131_v20 = vadd.f32 %v380_v18, %v130_v19  ;;  %v424_v21 = vpop.f32.mrb[1].mxu0 }
 0x125   :  { %v133_v22 = vpop.f32.mrb[2].mxu0 }
 0x126   :  { %v136_v23 = vmax.f32 %v131_v20, 0.0  ;;  %v425_v24 = vpop.f32.mrb[3].mxu0 }
 0x128   :  { %v137_v25 = vpack.c.bf16 %v136_v23, %v136_v23 }
 0x12a   :  { %443 = vmatmul.mubr.bf16.vlgmr.msra.gmra.mrb[0].mxu1 %v137_v25 }
 0x1fd   :  { %v243_v29 = vpop.f32.mrb[0].mxu1 }
 0x1fe   :  { %v244_v30 = vadd.f32 %v382_v28, %v243_v29  ;;  %v444_v31 = vpop.f32.mrb[1].mxu1 }
 0x1ff   :  { %v246_v32 = vpop.f32.mrb[2].mxu1 }
 0x200   :  { %v249_v33 = vmax.f32 %v244_v30, 0.0  ;;  %v445_v34 = vpop.f32.mrb[3].mxu1 }
 0x202   :  { %v250_v35 = vpack.c.bf16 %v249_v33, %v249_v33 }
 0x204   :  { %463 = vmatmul.mubr.bf16.vlgmr.msra.gmra.mrb[4].mxu0 %v250_v35 }
 0x2d7   :  { %v356_v37 = vpop.f32.mrb[4].mxu0 }
 0x2d8   :  { %v357_v38 = vadd.f32 %v391_v36, %v356_v37  ;;  %v464_v39 = vpop.f32.mrb[5].mxu0 }
 0x2d9   :  { %v359_v40 = vpop.f32.mrb[6].mxu0 }
 0x2da   :  { %362 = vst [vmem:[#allocation10] sm:$0x3] %v357_v38  ;;  %v465_v41 = vpop.f32.mrb[7].mxu0 }
 0x2db   :  { %590 = shalt.err (!%p587_p8)
}
 0x2dc   :  { %s591_s6 = scalar_lea.hbm %s757_s7, 32 }
 0x2dd   :  { %p592_p9 = scmp.ne.s32.totalorder %s757_s7, %s591_s6  ;;  %p595_p10 = scmp.lt.u32.totalorder %s591_s6, %s757_s7 }
 0x2df   :  { %p597_p11 = pnand %p595_p10, %p592_p9 }
 0x2e1   :  { %600 = shalt.err (!%p597_p11)
}
 0x2e2   :  { %372 = dma.vmem_to_hbm [thread:$0]  %s370_s8, 32, %s757_s7, [#allocation4]  }
 0x2e3   :  { %607 = dma.done.wait [#allocation4], 32  }
 0x2e4   :  { %608 = vsyncadd [#allocation4], 4294967264 }
 0x2e5   :  { %376 = vsyncpa [#allocation3], 1 }
 0x2e6   :  { %377 = vsyncpa [#allocation6], 1 }
 0x2e7   :  { %378 = vsyncpa [#allocation9], 1 }
 0x2e8   :  { %379 = vsyncpa [#allocation4], 1 }

</bundles_post_ra>
